<compile_context>
chip_gen: v7x
topology: tpu7x:2x2x1
jax: 0.10.0
libtpu: 0.0.40
codegen_flags: <defaults>
</compile_context>

<pallas_src>
import functools

import numpy as np

import jax
import jax.numpy as jnp
from jax.experimental import pallas as pl
from jax.experimental.pallas import tpu as pltpu


def _resblock_kernel(x_ref, a1_ref, b1_ref, a2_ref, b2_ref, o_ref, *, C, W):
    # x_ref : (B, H, W*C)        bf16  lane-dense NHWC input tile (B images)
    # a*_ref: (3, (W+2)*C, W*C)  bf16  BN-folded weights; one block-structured matrix
    #                                  per kernel row ky (dx taps baked in)
    # b*_ref: (1, W*C)           f32   BN-folded bias, tiled across w
    # o_ref : (B, H, W*C)        out dtype
    B, H, WC = o_ref.shape
    WpC = (W + 2) * C
    M = B * H

    def conv_bn_relu(t, a_ref, b_ref):
        # t: (B, H, W*C) bf16 -> relu(bn(conv3x3(reflect_pad1(t)))): (B, H, W*C) f32
        # Reflection along W: single lane concat; the dx taps live inside a_ref.
        tp = jnp.concatenate(
            [t[:, :, C:2 * C], t, t[:, :, (W - 2) * C:(W - 1) * C]], axis=2)
        # Reflection along H + dy taps: pure row addressing (sublane concats), no
        # padded (H+2, W+2, C) copy.
        t_up = jnp.concatenate([tp[:, 1:2, :], tp[:, :H - 1, :]], axis=1)      # ky = 0
        t_dn = jnp.concatenate([tp[:, 1:, :], tp[:, H - 2:H - 1, :]], axis=1)  # ky = 2
        # Three accumulating matmuls; the f32 accumulator stays a value (vregs).
        acc = jnp.dot(t_up.reshape(M, WpC), a_ref[0],
                      preferred_element_type=jnp.float32)
        acc = acc + jnp.dot(tp.reshape(M, WpC), a_ref[1],
                            preferred_element_type=jnp.float32)
        acc = acc + jnp.dot(t_dn.reshape(M, WpC), a_ref[2],
                            preferred_element_type=jnp.float32)
        acc = acc + b_ref[...]
        return jnp.maximum(acc, 0.0).reshape(B, H, WC)

    x = x_ref[...]                                        # (B, H, W*C) bf16
    y = conv_bn_relu(x, a1_ref, b1_ref)                   # f32
    z = conv_bn_relu(y.astype(jnp.bfloat16), a2_ref, b2_ref)
    o_ref[...] = (z + x.astype(jnp.float32)).astype(o_ref.dtype)   # residual in f32


def _shift_matrix(W, kx):
    # ((W+2), W) selection matrix: output column w reads padded-input column w + kx.
    P = np.zeros((W + 2, W), np.float32)
    for w in range(W):
        P[w + kx, w] = 1.0
    return jnp.asarray(P)


def prepare_resblock_params(w1, b1, w2, b2, gamma, beta, running_mean, running_var,
                            W, eps=1e-5):
    """Fold inference-mode BatchNorm into both convs (exact f32 algebra) and build the
    per-kernel-row block-structured weight matrices for the lane-dense kernel."""
    OC, C = w1.shape[0], w1.shape[1]
    assert OC == C, "residual add requires innd == outnd"

    s = gamma / jnp.sqrt(running_var + eps)   # per-channel BN scale
    t = beta - running_mean * s               # per-channel BN shift

    def fold(w, b):
        return w * s[:, None, None, None], b * s + t

    def build(w_eff):
        # A_ky[p*C + ci, w*C + co] = w_eff[co, ci, ky, kx] with p = w + kx, where p
        # indexes the W-reflection-padded input columns.
        mats = []
        for ky in range(3):
            A = sum(jnp.kron(_shift_matrix(W, kx), w_eff[:, :, ky, kx].T)
                    for kx in range(3))
            mats.append(A)
        return jnp.stack(mats, 0).astype(jnp.bfloat16)    # (3, (W+2)*C, W*C)

    w1_eff, b1_eff = fold(w1, b1)
    w2_eff, b2_eff = fold(w2, b2)
    return dict(
        C=C, W=W,
        a1=build(w1_eff), b1=jnp.tile(b1_eff, W)[None, :].astype(jnp.float32),
        a2=build(w2_eff), b2=jnp.tile(b2_eff, W)[None, :].astype(jnp.float32),
    )


def _pick_batch_tile(n, max_tile=8):
    # Largest divisor of n that is <= max_tile (amortizes per-grid-step overhead).
    for t in range(min(n, max_tile), 0, -1):
        if n % t == 0:
            return t
    return 1


def _vmem_limit_bytes():
    # Raise the scoped-VMEM limit (defaults: 16/32/32 MiB on v5e/v6e/v7x), keeping
    # headroom below physical capacity (128/128/64 MiB).
    try:
        return int(pltpu.get_tpu_info().vmem_capacity_bytes * 3 // 4)
    except Exception:
        return 64 * 1024 * 1024


def resblock_lane_dense(x_ld, params, *, out_dtype=jnp.bfloat16):
    """Fused ResBlock on lane-dense activations.

    x_ld: (N, H, W*C) NHWC activations flattened along the lane axis (cast to bf16 for
    the kernel).  Returns (N, H, W*C) in `out_dtype`.  Chain this directly for stacks
    of ResBlocks to avoid per-block layout conversions.
    """
    N, H, WC = x_ld.shape
    C, W = params["C"], params["W"]
    assert WC == W * C and H >= 2 and W >= 2
    a1, b1, a2, b2 = params["a1"], params["b1"], params["a2"], params["b2"]
    WpC = (W + 2) * C
    assert a1.shape == (3, WpC, WC) and a2.shape == (3, WpC, WC)

    bt = _pick_batch_tile(N)
    kernel = functools.partial(_resblock_kernel, C=C, W=W)

    return pl.pallas_call(
        kernel,
        out_shape=jax.ShapeDtypeStruct((N, H, WC), out_dtype),
        grid_spec=pltpu.PrefetchScalarGridSpec(
            num_scalar_prefetch=0,
            grid=(N // bt,),
            in_specs=[
                pl.BlockSpec((bt, H, WC), lambda n: (n, 0, 0)),
                pl.BlockSpec((3, WpC, WC), lambda n: (0, 0, 0)),
                pl.BlockSpec((1, WC), lambda n: (0, 0)),
                pl.BlockSpec((3, WpC, WC), lambda n: (0, 0, 0)),
                pl.BlockSpec((1, WC), lambda n: (0, 0)),
            ],
            out_specs=pl.BlockSpec((bt, H, WC), lambda n: (n, 0, 0)),
        ),
        compiler_params=pltpu.CompilerParams(
            dimension_semantics=("parallel",),
            vmem_limit_bytes=_vmem_limit_bytes(),
        ),
    )(x_ld.astype(jnp.bfloat16), a1, b1, a2, b2)


def resblock_forward(x_nchw, w1, b1, w2, b2, gamma, beta, running_mean, running_var,
                     eps=1e-5, out_dtype=jnp.bfloat16):
    """NCHW adapter around the lane-dense kernel (layout converted once here).  For a
    stack of ResBlocks, hoist this conversion to the network boundary and chain
    resblock_lane_dense() on (N, H, W*C) activations instead."""
    N, C, H, W = x_nchw.shape
    assert w1.shape == (C, C, 3, 3) and w2.shape == (C, C, 3, 3)
    assert H >= 2 and W >= 2, "ReflectionPad2d(1) needs spatial dims >= 2"
    params = prepare_resblock_params(w1, b1, w2, b2, gamma, beta, running_mean,
                                     running_var, W, eps)
    x_ld = jnp.transpose(x_nchw, (0, 2, 3, 1)).reshape(N, H, W * C)
    out_ld = resblock_lane_dense(x_ld, params, out_dtype=out_dtype)
    return jnp.transpose(out_ld.reshape(N, H, W, C), (0, 3, 1, 2))


def _reference(x_nchw, w1, b1, w2, b2, gamma, beta, running_mean, running_var, eps=1e-5):
    """Pure-JAX reference with the same bf16-input / f32-accumulation numerics."""
    s = gamma / jnp.sqrt(running_var + eps)
    t = beta - running_mean * s
    w1_eff = (w1 * s[:, None, None, None]).astype(jnp.bfloat16)
    b1_eff = (b1 * s + t).astype(jnp.float32)
    w2_eff = (w2 * s[:, None, None, None]).astype(jnp.bfloat16)
    b2_eff = (b2 * s + t).astype(jnp.float32)
    xb = x_nchw.astype(jnp.bfloat16)

    def conv(v, w, b):
        vp = jnp.pad(v, ((0, 0), (0, 0), (1, 1), (1, 1)), mode="reflect")
        z = jax.lax.conv_general_dilated(
            vp, w, (1, 1), "VALID",
            dimension_numbers=("NCHW", "OIHW", "NCHW"),
            preferred_element_type=jnp.float32)
        return z + b.reshape(1, -1, 1, 1)

    y = jnp.maximum(conv(xb, w1_eff, b1_eff), 0.0)
    out = jnp.maximum(conv(y.astype(jnp.bfloat16), w2_eff, b2_eff), 0.0)
    return out + xb.astype(jnp.float32)


if __name__ == "__main__":
    key = jax.random.PRNGKey(0)
    keys = jax.random.split(key, 9)

    # Small shapes consistent with the module (innd == outnd): batch=2, channels=4, 16x16.
    N, C, H, W = 2, 4, 16, 16

    x = jax.random.normal(keys[0], (N, C, H, W), dtype=jnp.float32)
    w1 = jax.random.normal(keys[1], (C, C, 3, 3), dtype=jnp.float32) * 0.1
    b1 = jax.random.normal(keys[2], (C,), dtype=jnp.float32) * 0.1
    w2 = jax.random.normal(keys[3], (C, C, 3, 3), dtype=jnp.float32) * 0.1
    b2 = jax.random.normal(keys[4], (C,), dtype=jnp.float32) * 0.1
    gamma = 1.0 + 0.1 * jax.random.normal(keys[5], (C,), dtype=jnp.float32)
    beta = 0.1 * jax.random.normal(keys[6], (C,), dtype=jnp.float32)
    running_mean = 0.1 * jax.random.normal(keys[7], (C,), dtype=jnp.float32)
    running_var = jax.random.uniform(keys[8], (C,), minval=0.5, maxval=1.5,
                                     dtype=jnp.float32)

    ref = _reference(x, w1, b1, w2, b2, gamma, beta, running_mean, running_var)

    # f32 output path: tight check against the bf16-input / f32-accum reference.
    out = resblock_forward(x, w1, b1, w2, b2, gamma, beta, running_mean, running_var,
                           out_dtype=jnp.float32)
    out = jax.block_until_ready(out)
    assert out.shape == (N, C, H, W), out.shape
    err = float(jnp.max(jnp.abs(out - ref)))
    assert jnp.allclose(out, ref, rtol=1e-2, atol=1e-2), err

    # Default bf16 output path (halves writeback HBM traffic): bf16-level tolerance.
    out_bf16 = resblock_forward(x, w1, b1, w2, b2, gamma, beta, running_mean,
                                running_var, out_dtype=jnp.bfloat16)
    out_bf16 = jax.block_until_ready(out_bf16).astype(jnp.float32)
    err_bf16 = float(jnp.max(jnp.abs(out_bf16 - ref)))
    assert jnp.allclose(out_bf16, ref, rtol=2e-2, atol=2e-2), err_bf16

    print("KERNEL_OK")
</pallas_src>

<mosaic_0001>
module attributes {stable_mosaic.version = 11 : i64} {
  func.func @_resblock_kernel(%arg0: i32, %arg1: memref<2x16x64xbf16, #tpu.memory_space<vmem>>, %arg2: memref<3x72x64xbf16, #tpu.memory_space<vmem>>, %arg3: memref<1x64xf32, #tpu.memory_space<vmem>>, %arg4: memref<3x72x64xbf16, #tpu.memory_space<vmem>>, %arg5: memref<1x64xf32, #tpu.memory_space<vmem>>, %arg6: memref<2x16x64xf32, #tpu.memory_space<vmem>>) attributes {dimension_semantics = [#tpu.dimension_semantics<parallel>], iteration_bounds = array<i64: 1>, scalar_prefetch = 0 : i64, scratch_operands = 0 : i64, tpu.core_type = #tpu.core_type<tc>, window_params = [{transform_indices = @transform_0, window_bounds = array<i64: 2, 16, 64>}, {pipeline_mode = #tpu.pipeline_mode<synchronous>, transform_indices = @transform_1, window_bounds = array<i64: 3, 72, 64>}, {pipeline_mode = #tpu.pipeline_mode<synchronous>, transform_indices = @transform_2, window_bounds = array<i64: 1, 64>}, {pipeline_mode = #tpu.pipeline_mode<synchronous>, transform_indices = @transform_3, window_bounds = array<i64: 3, 72, 64>}, {pipeline_mode = #tpu.pipeline_mode<synchronous>, transform_indices = @transform_4, window_bounds = array<i64: 1, 64>}, {transform_indices = @transform_5, window_bounds = array<i64: 2, 16, 64>}]} {
    %c0 = arith.constant 0 : index
    %c0_0 = arith.constant 0 : index
    %c0_1 = arith.constant 0 : index
    %0 = vector.load %arg1[%c0, %c0_0, %c0_1] : memref<2x16x64xbf16, #tpu.memory_space<vmem>>, vector<2x16x64xbf16>
    %1 = vector.extract_strided_slice %0 {offsets = [0, 0, 4], sizes = [2, 16, 4], strides = [1, 1, 1]} : vector<2x16x64xbf16> to vector<2x16x4xbf16>
    %2 = vector.extract_strided_slice %0 {offsets = [0, 0, 56], sizes = [2, 16, 4], strides = [1, 1, 1]} : vector<2x16x64xbf16> to vector<2x16x4xbf16>
    %3 = tpu.concatenate %1, %0, %2 in 2 : vector<2x16x4xbf16>, vector<2x16x64xbf16>, vector<2x16x4xbf16> -> vector<2x16x72xbf16>
    %4 = vector.extract_strided_slice %3 {offsets = [0, 1, 0], sizes = [2, 1, 72], strides = [1, 1, 1]} : vector<2x16x72xbf16> to vector<2x1x72xbf16>
    %5 = vector.extract_strided_slice %3 {offsets = [0, 0, 0], sizes = [2, 15, 72], strides = [1, 1, 1]} : vector<2x16x72xbf16> to vector<2x15x72xbf16>
    %6 = tpu.concatenate %4, %5 in 1 : vector<2x1x72xbf16>, vector<2x15x72xbf16> -> vector<2x16x72xbf16>
    %7 = vector.extract_strided_slice %3 {offsets = [0, 1, 0], sizes = [2, 15, 72], strides = [1, 1, 1]} : vector<2x16x72xbf16> to vector<2x15x72xbf16>
    %8 = vector.extract_strided_slice %3 {offsets = [0, 14, 0], sizes = [2, 1, 72], strides = [1, 1, 1]} : vector<2x16x72xbf16> to vector<2x1x72xbf16>
    %9 = tpu.concatenate %7, %8 in 1 : vector<2x15x72xbf16>, vector<2x1x72xbf16> -> vector<2x16x72xbf16>
    %10 = vector.shape_cast %6 : vector<2x16x72xbf16> to vector<32x72xbf16>
    %c0_2 = arith.constant 0 : index
    %c0_3 = arith.constant 0 : index
    %c0_4 = arith.constant 0 : index
    %11 = vector.load %arg2[%c0_2, %c0_3, %c0_4] : memref<3x72x64xbf16, #tpu.memory_space<vmem>>, vector<1x72x64xbf16>
    %12 = vector.shape_cast %11 : vector<1x72x64xbf16> to vector<72x64xbf16>
    %cst = arith.constant dense<0.000000e+00> : vector<32x64xf32>
    %13 = tpu.matmul %10, %12, %cst {dimension_numbers = #tpu.dot_dimension_numbers<[1], [0], [0], [1], [0, 0, 1, 1], [], []>} : vector<32x72xbf16>, vector<72x64xbf16>, vector<32x64xf32> -> vector<32x64xf32>
    %14 = vector.shape_cast %3 : vector<2x16x72xbf16> to vector<32x72xbf16>
    %c1 = arith.constant 1 : index
    %c0_5 = arith.constant 0 : index
    %c0_6 = arith.constant 0 : index
    %15 = vector.load %arg2[%c1, %c0_5, %c0_6] : memref<3x72x64xbf16, #tpu.memory_space<vmem>>, vector<1x72x64xbf16>
    %16 = vector.shape_cast %15 : vector<1x72x64xbf16> to vector<72x64xbf16>
    %cst_7 = arith.constant dense<0.000000e+00> : vector<32x64xf32>
    %17 = tpu.matmul %14, %16, %cst_7 {dimension_numbers = #tpu.dot_dimension_numbers<[1], [0], [0], [1], [0, 0, 1, 1], [], []>} : vector<32x72xbf16>, vector<72x64xbf16>, vector<32x64xf32> -> vector<32x64xf32>
    %18 = arith.addf %13, %17 : vector<32x64xf32>
    %19 = vector.shape_cast %9 : vector<2x16x72xbf16> to vector<32x72xbf16>
    %c2 = arith.constant 2 : index
    %c0_8 = arith.constant 0 : index
    %c0_9 = arith.constant 0 : index
    %20 = vector.load %arg2[%c2, %c0_8, %c0_9] : memref<3x72x64xbf16, #tpu.memory_space<vmem>>, vector<1x72x64xbf16>
    %21 = vector.shape_cast %20 : vector<1x72x64xbf16> to vector<72x64xbf16>
    %cst_10 = arith.constant dense<0.000000e+00> : vector<32x64xf32>
    %22 = tpu.matmul %19, %21, %cst_10 {dimension_numbers = #tpu.dot_dimension_numbers<[1], [0], [0], [1], [0, 0, 1, 1], [], []>} : vector<32x72xbf16>, vector<72x64xbf16>, vector<32x64xf32> -> vector<32x64xf32>
    %23 = arith.addf %18, %22 : vector<32x64xf32>
    %c0_11 = arith.constant 0 : index
    %c0_12 = arith.constant 0 : index
    %24 = vector.load %arg3[%c0_11, %c0_12] : memref<1x64xf32, #tpu.memory_space<vmem>>, vector<1x64xf32>
    %25 = vector.broadcast %24 : vector<1x64xf32> to vector<32x64xf32>
    %26 = arith.addf %23, %25 : vector<32x64xf32>
    %cst_13 = arith.constant 0.000000e+00 : f32
    %27 = vector.broadcast %cst_13 : f32 to vector<32x64xf32>
    %28 = arith.maximumf %26, %27 : vector<32x64xf32>
    %29 = vector.shape_cast %28 : vector<32x64xf32> to vector<2x16x64xf32>
    %30 = arith.truncf %29 : vector<2x16x64xf32> to vector<2x16x64xbf16>
    %31 = vector.extract_strided_slice %30 {offsets = [0, 0, 4], sizes = [2, 16, 4], strides = [1, 1, 1]} : vector<2x16x64xbf16> to vector<2x16x4xbf16>
    %32 = vector.extract_strided_slice %30 {offsets = [0, 0, 56], sizes = [2, 16, 4], strides = [1, 1, 1]} : vector<2x16x64xbf16> to vector<2x16x4xbf16>
    %33 = tpu.concatenate %31, %30, %32 in 2 : vector<2x16x4xbf16>, vector<2x16x64xbf16>, vector<2x16x4xbf16> -> vector<2x16x72xbf16>
    %34 = vector.extract_strided_slice %33 {offsets = [0, 1, 0], sizes = [2, 1, 72], strides = [1, 1, 1]} : vector<2x16x72xbf16> to vector<2x1x72xbf16>
    %35 = vector.extract_strided_slice %33 {offsets = [0, 0, 0], sizes = [2, 15, 72], strides = [1, 1, 1]} : vector<2x16x72xbf16> to vector<2x15x72xbf16>
    %36 = tpu.concatenate %34, %35 in 1 : vector<2x1x72xbf16>, vector<2x15x72xbf16> -> vector<2x16x72xbf16>
    %37 = vector.extract_strided_slice %33 {offsets = [0, 1, 0], sizes = [2, 15, 72], strides = [1, 1, 1]} : vector<2x16x72xbf16> to vector<2x15x72xbf16>
    %38 = vector.extract_strided_slice %33 {offsets = [0, 14, 0], sizes = [2, 1, 72], strides = [1, 1, 1]} : vector<2x16x72xbf16> to vector<2x1x72xbf16>
    %39 = tpu.concatenate %37, %38 in 1 : vector<2x15x72xbf16>, vector<2x1x72xbf16> -> vector<2x16x72xbf16>
    %40 = vector.shape_cast %36 : vector<2x16x72xbf16> to vector<32x72xbf16>
    %c0_14 = arith.constant 0 : index
    %c0_15 = arith.constant 0 : index
    %c0_16 = arith.constant 0 : index
    %41 = vector.load %arg4[%c0_14, %c0_15, %c0_16] : memref<3x72x64xbf16, #tpu.memory_space<vmem>>, vector<1x72x64xbf16>
    %42 = vector.shape_cast %41 : vector<1x72x64xbf16> to vector<72x64xbf16>
    %cst_17 = arith.constant dense<0.000000e+00> : vector<32x64xf32>
    %43 = tpu.matmul %40, %42, %cst_17 {dimension_numbers = #tpu.dot_dimension_numbers<[1], [0], [0], [1], [0, 0, 1, 1], [], []>} : vector<32x72xbf16>, vector<72x64xbf16>, vector<32x64xf32> -> vector<32x64xf32>
    %44 = vector.shape_cast %33 : vector<2x16x72xbf16> to vector<32x72xbf16>
    %c1_18 = arith.constant 1 : index
    %c0_19 = arith.constant 0 : index
    %c0_20 = arith.constant 0 : index
    %45 = vector.load %arg4[%c1_18, %c0_19, %c0_20] : memref<3x72x64xbf16, #tpu.memory_space<vmem>>, vector<1x72x64xbf16>
    %46 = vector.shape_cast %45 : vector<1x72x64xbf16> to vector<72x64xbf16>
    %cst_21 = arith.constant dense<0.000000e+00> : vector<32x64xf32>
    %47 = tpu.matmul %44, %46, %cst_21 {dimension_numbers = #tpu.dot_dimension_numbers<[1], [0], [0], [1], [0, 0, 1, 1], [], []>} : vector<32x72xbf16>, vector<72x64xbf16>, vector<32x64xf32> -> vector<32x64xf32>
    %48 = arith.addf %43, %47 : vector<32x64xf32>
    %49 = vector.shape_cast %39 : vector<2x16x72xbf16> to vector<32x72xbf16>
    %c2_22 = arith.constant 2 : index
    %c0_23 = arith.constant 0 : index
    %c0_24 = arith.constant 0 : index
    %50 = vector.load %arg4[%c2_22, %c0_23, %c0_24] : memref<3x72x64xbf16, #tpu.memory_space<vmem>>, vector<1x72x64xbf16>
    %51 = vector.shape_cast %50 : vector<1x72x64xbf16> to vector<72x64xbf16>
    %cst_25 = arith.constant dense<0.000000e+00> : vector<32x64xf32>
    %52 = tpu.matmul %49, %51, %cst_25 {dimension_numbers = #tpu.dot_dimension_numbers<[1], [0], [0], [1], [0, 0, 1, 1], [], []>} : vector<32x72xbf16>, vector<72x64xbf16>, vector<32x64xf32> -> vector<32x64xf32>
    %53 = arith.addf %48, %52 : vector<32x64xf32>
    %c0_26 = arith.constant 0 : index
    %c0_27 = arith.constant 0 : index
    %54 = vector.load %arg5[%c0_26, %c0_27] : memref<1x64xf32, #tpu.memory_space<vmem>>, vector<1x64xf32>
    %55 = vector.broadcast %54 : vector<1x64xf32> to vector<32x64xf32>
    %56 = arith.addf %53, %55 : vector<32x64xf32>
    %cst_28 = arith.constant 0.000000e+00 : f32
    %57 = vector.broadcast %cst_28 : f32 to vector<32x64xf32>
    %58 = arith.maximumf %56, %57 : vector<32x64xf32>
    %59 = vector.shape_cast %58 : vector<32x64xf32> to vector<2x16x64xf32>
    %60 = arith.extf %0 : vector<2x16x64xbf16> to vector<2x16x64xf32>
    %61 = arith.addf %59, %60 : vector<2x16x64xf32>
    %c0_29 = arith.constant 0 : index
    %c0_30 = arith.constant 0 : index
    %c0_31 = arith.constant 0 : index
    %62 = vector.load %arg6[%c0_29, %c0_30, %c0_31] : memref<2x16x64xf32, #tpu.memory_space<vmem>>, vector<2x16x64xf32>
    tpu.vector_store %arg6[%c0_29, %c0_30, %c0_31], %61 {strides = array<i32>} : memref<2x16x64xf32, #tpu.memory_space<vmem>>, vector<2x16x64xf32>,
    return
  }
  func.func @transform_0(%arg0: i32) -> (i32, i32, i32) {
    %c0_i32 = arith.constant 0 : i32
    %c0_i32_0 = arith.constant 0 : i32
    %c0_i32_1 = arith.constant 0 : i32
    return %arg0, %c0_i32, %c0_i32_0 : i32, i32, i32
  }
  func.func @transform_1(%arg0: i32) -> (i32, i32, i32) {
    %c0_i32 = arith.constant 0 : i32
    %c0_i32_0 = arith.constant 0 : i32
    %c0_i32_1 = arith.constant 0 : i32
    %c0_i32_2 = arith.constant 0 : i32
    return %c0_i32, %c0_i32_0, %c0_i32_1 : i32, i32, i32
  }
  func.func @transform_2(%arg0: i32) -> (i32, i32) {
    %c0_i32 = arith.constant 0 : i32
    %c0_i32_0 = arith.constant 0 : i32
    %c0_i32_1 = arith.constant 0 : i32
    return %c0_i32, %c0_i32_0 : i32, i32
  }
  func.func @transform_3(%arg0: i32) -> (i32, i32, i32) {
    %c0_i32 = arith.constant 0 : i32
    %c0_i32_0 = arith.constant 0 : i32
    %c0_i32_1 = arith.constant 0 : i32
    %c0_i32_2 = arith.constant 0 : i32
    return %c0_i32, %c0_i32_0, %c0_i32_1 : i32, i32, i32
  }
  func.func @transform_4(%arg0: i32) -> (i32, i32) {
    %c0_i32 = arith.constant 0 : i32
    %c0_i32_0 = arith.constant 0 : i32
    %c0_i32_1 = arith.constant 0 : i32
    return %c0_i32, %c0_i32_0 : i32, i32
  }
  func.func @transform_5(%arg0: i32) -> (i32, i32, i32) {
    %c0_i32 = arith.constant 0 : i32
    %c0_i32_0 = arith.constant 0 : i32
    %c0_i32_1 = arith.constant 0 : i32
    return %arg0, %c0_i32, %c0_i32_0 : i32, i32, i32
  }
}

</mosaic_0001>

<bundles_post_ra>
// kernel: tpu_custom_call.1
= control target key start
LH: loop header
LB: loop body
LE: loop exit
PB: predicated region body
PF: predicated region fallthrough
CT: control target
= control target key end

     0   :  { %10 = vsyncpa [#allocation3], 0  ;;  %s1444_s0 = inlined_call_operand.hbm [shape: bf16[2,16,64], index: 0, kind: input, shape index: {}]   ;;  %s1445_s1 = inlined_call_operand.hbm [shape: bf16[3,72,64], index: 1, kind: input, shape index: {}]   ;;  %s1446_s2 = inlined_call_operand.hbm [shape: f32[1,64], index: 2, kind: input, shape index: {}]   ;;  %s1447_s3 = inlined_call_operand.hbm [shape: bf16[3,72,64], index: 3, kind: input, shape index: {}]   ;;  %s1448_s4 = inlined_call_operand.hbm [shape: f32[1,64], index: 4, kind: input, shape index: {}]   ;;  %s1449_s5 = inlined_call_operand.hbm [shape: f32[2,16,64], index: 5, kind: output, shape index: {}]  }
   0x1   :  { %11 = vsyncpa [#allocation6], 0 }
   0x2   :  { %12 = vsyncpa [#allocation9], 0 }
   0x3   :  { %13 = vsyncpa [#allocation4], 0  ;;  %s1228_s18 = smov [#allocation5]   ;;  %s1229_s20 = smov [#allocation8]  }
   0x4   :  { %s31_s19 = sshll.u32 %s1228_s18, 4  ;;  %s53_s21 = sshll.u32 %s1229_s20, 4  ;;  %s32_s19 = int_to_ptr.vmem [resolvable:$true] %s31_s19  ;;  %s1270_s21 = int_to_ptr.vmem [resolvable:$true] %s53_s21 }
   0x5   :  { %s1088_s24 = scalar_lea.hbm %s1445_s1, 1728 }
   0x6   :  { %p1089_p0 = scmp.ne.s32.totalorder %s1445_s1, %s1088_s24  ;;  %p1092_p1 = scmp.lt.u32.totalorder %s1088_s24, %s1445_s1 }
   0x8   :  { %p1094_p2 = pnand %p1092_p1, %p1089_p0 }
   0xa   :  { %1097 = shalt.err (!%p1094_p2)
}
   0xb   :  { %s1098_s29 = scalar_lea.vmem %s32_s19, 1728  ;;  %p1103_p4 = scmp.lt.s32.totalorder %s32_s19, %s32_s19 }
   0xc   :  { %p1099_p3 = scmp.ne.s32.totalorder %s32_s19, %s1098_s29  ;;  %p1104_p5 = scmp.lt.s32.totalorder %s1098_s29, %s1098_s29 }
   0xe   :  { %p1105_p6 = por %p1104_p5, %p1103_p4 }
  0x10   :  { %p1106_p7 = pnand %p1105_p6, %p1099_p3 }
  0x12   :  { %1109 = shalt.err (!%p1106_p7)
}
  0x13   :  { %s1230_s30 = smov 64   ;;  %s1231_s6 = smov 4  }
  0x14   :  { %37 = dma.hbm_to_vmem [thread:$0]  %s1445_s1, 1728, %s32_s19, [#allocation6], %s1230_s30, %s1230_s30, %s1231_s6  }
  0x15   :  { %s1110_s11 = scalar_lea.hbm %s1447_s3, 1728 }
  0x16   :  { %p1111_p8 = scmp.ne.s32.totalorder %s1447_s3, %s1110_s11  ;;  %p1114_p9 = scmp.lt.u32.totalorder %s1110_s11, %s1447_s3 }
  0x18   :  { %p1116_p10 = pnand %p1114_p9, %p1111_p8 }
  0x1a   :  { %1119 = shalt.err (!%p1116_p10)
}
  0x1b   :  { %s1120_s16 = scalar_lea.vmem %s1270_s21, 1728  ;;  %p1125_p12 = scmp.lt.s32.totalorder %s1270_s21, %s1270_s21 }
  0x1c   :  { %p1121_p11 = scmp.ne.s32.totalorder %s1270_s21, %s1120_s16  ;;  %p1126_p13 = scmp.lt.s32.totalorder %s1120_s16, %s1120_s16 }
  0x1e   :  { %p1127_p0 = por %p1126_p13, %p1125_p12 }
  0x20   :  { %p1128_p1 = pnand %p1127_p0, %p1121_p11 }
  0x22   :  { %1131 = shalt.err (!%p1128_p1)
}
  0x23   :  { %59 = dma.hbm_to_vmem [thread:$0]  %s1447_s3, 1728, %s1270_s21, [#allocation9], %s1230_s30, %s1230_s30, %s1231_s6  }
  0x24   :  { %s1232_s18 = smov [#allocation2]   ;;  %s1233_s20 = smov [#allocation7]  }
  0x25   :  { %s19_s19 = sshll.u32 %s1232_s18, 4  ;;  %s44_s22 = sshll.u32 %s1233_s20, 4  ;;  %s20_s19 = int_to_ptr.vmem [resolvable:$true] %s19_s19  ;;  %s45_s22 = int_to_ptr.vmem [resolvable:$true] %s44_s22 }
  0x26   :  { %s1132_s25 = scalar_lea.hbm %s1444_s0, 256 }
  0x27   :  { %p1133_p2 = scmp.ne.s32.totalorder %s1444_s0, %s1132_s25  ;;  %p1136_p3 = scmp.lt.u32.totalorder %s1132_s25, %s1444_s0 }
  0x29   :  { %p1138_p4 = pnand %p1136_p3, %p1133_p2 }
  0x2b   :  { %1141 = shalt.err (!%p1138_p4)
}
  0x2c   :  { %s1142_s3 = scalar_lea.vmem %s20_s19, 256  ;;  %p1147_p6 = scmp.lt.s32.totalorder %s20_s19, %s20_s19 }
  0x2d   :  { %p1143_p5 = scmp.ne.s32.totalorder %s20_s19, %s1142_s3  ;;  %p1148_p7 = scmp.lt.s32.totalorder %s1142_s3, %s1142_s3 }
  0x2f   :  { %p1149_p8 = por %p1148_p7, %p1147_p6 }
  0x31   :  { %p1150_p9 = pnand %p1149_p8, %p1143_p5 }
  0x33   :  { %1153 = shalt.err (!%p1150_p9)
}
  0x34   :  { %25 = dma.hbm_to_vmem [thread:$0]  %s1444_s0, 256, %s20_s19, [#allocation3], %s1230_s30, %s1230_s30, %s1231_s6  }
  0x35   :  { %s1154_s10 = scalar_lea.hbm %s1446_s2, 16 }
  0x36   :  { %p1155_p10 = scmp.ne.s32.totalorder %s1446_s2, %s1154_s10  ;;  %p1158_p11 = scmp.lt.u32.totalorder %s1154_s10, %s1446_s2 }
  0x38   :  { %p1160_p12 = pnand %p1158_p11, %p1155_p10 }
  0x3a   :  { %1163 = shalt.err (!%p1160_p12)
}
  0x3b   :  { %s1164_s15 = scalar_lea.vmem %s45_s22, 16  ;;  %s1168_s16 = scalar_lea.vmem %s45_s22, 32 }
  0x3c   :  { %p1165_p13 = scmp.ne.s32.totalorder %s45_s22, %s1164_s15  ;;  %p1169_p0 = scmp.lt.s32.totalorder %s45_s22, %s45_s22 }
  0x3d   :  { %p1170_p1 = scmp.lt.s32.totalorder %s1168_s16, %s1164_s15 }
  0x3f   :  { %p1171_p2 = por %p1170_p1, %p1169_p0 }
  0x41   :  { %p1172_p3 = pnand %p1171_p2, %p1165_p13 }
  0x43   :  { %1175 = shalt.err (!%p1172_p3)
}
  0x44   :  { %47 = dma.hbm_to_vmem [thread:$0]  %s1446_s2, 16, %s45_s22, [#allocation6]  }
  0x45   :  { %s1234_s1 = smov [#allocation10]   ;;  %s1176_s20 = scalar_lea.hbm %s1448_s4, 16 }
  0x46   :  { %s66_s17 = sshll.u32 %s1234_s1, 4  ;;  %p1177_p4 = scmp.ne.s32.totalorder %s1448_s4, %s1176_s20  ;;  %s67_s17 = int_to_ptr.vmem [resolvable:$true] %s66_s17 }
  0x47   :  { %p1180_p5 = scmp.lt.u32.totalorder %s1176_s20, %s1448_s4 }
  0x49   :  { %p1182_p6 = pnand %p1180_p5, %p1177_p4 }
  0x4b   :  { %1185 = shalt.err (!%p1182_p6)
}
  0x4c   :  { %s1186_s27 = scalar_lea.vmem %s67_s17, 16  ;;  %s1190_s2 = scalar_lea.vmem %s67_s17, 32 }
  0x4d   :  { %p1187_p7 = scmp.ne.s32.totalorder %s67_s17, %s1186_s27  ;;  %p1191_p8 = scmp.lt.s32.totalorder %s67_s17, %s67_s17 }
  0x4e   :  { %p1192_p9 = scmp.lt.s32.totalorder %s1190_s2, %s1186_s27 }
  0x50   :  { %p1193_p10 = por %p1192_p9, %p1191_p8 }
  0x52   :  { %p1194_p11 = pnand %p1193_p10, %p1187_p7 }
  0x54   :  { %1197 = shalt.err (!%p1194_p11)
}
  0x55   :  { %69 = dma.hbm_to_vmem [thread:$0]  %s1448_s4, 16, %s67_s17, [#allocation9]  }
  0x56   :  { %1220 = dma.done.wait [#allocation3], 256  }
  0x57   :  { %1221 = vsyncadd [#allocation3], 4294967040 }
  0x58   :  { %1222 = dma.done.wait [#allocation6], 1744  }
  0x59   :  { %1223 = vsyncadd [#allocation6], 4294965552 }
  0x5a   :  { %1224 = dma.done.wait [#allocation9], 1744  }
  0x5b   :  { %1225 = vsyncadd [#allocation9], 4294965552  ;;  %v1346_v0 = vld [vmem:[#allocation2 + $0x8] sm:$0xff]   ;;  %v1348_v1 = vld [vmem:[#allocation2] sm:$0xff]   ;;  %s1235_s29 = smov 124   ;;  %s1236_s4 = smov 12  }
  0x5c   :  { %v1056_v2 = vld [vmem:[#allocation5 + $0x24] sm:$0xff]   ;;  %v1057_v3 = vld [vmem:[#allocation5 + $0x2c] sm:$0xff]   ;;  %102 = vrot.lane.b32.xlu1 %v1346_v0, %s1235_s29  ;;  %100 = vrot.lane.b32.xlu0 %v1348_v1, %s1235_s29  ;;  %v1058_v4 = vld [vmem:[#allocation5 + $0x34] sm:$0xff]   ;;  %vm209_vm0 = vcmask 1043456   ;;  %vm112_vm1 = vcmask 31744   ;;  %vm119_vm2 = vcmask 556032  }
  0x5d   :  { %936 = vmatprep.subr.bf16.mxu0 %v1056_v2  ;;  %v1059_v5 = vld [vmem:[#allocation5 + $0x3c] sm:$0xff]   ;;  %v1060_v6 = vld [vmem:[#allocation5 + $0x44] ss:$0 sps:$4 sm:$0xff]   ;;  %vm204_vm3 = vcmask 588800   ;;  %v1062_v19 = vld [vmem:[#allocation5 + $0x8] sm:$0xff]   ;;  %vm140_vm4 = vcmask 1040384  }
  0x5e   :  { %937 = vmatpush3.bf16.msra.mxu0 %v1056_v2  ;;  %v211_v7 = vsel %vm209_vm0, %v1060_v6, 0  ;;  %v1061_v8 = vld [vmem:[#allocation5] sm:$0xff]   ;;  %vm141_vm5 = vsmask.f32 256  ;;  %v1063_v24 = vld [vmem:[#allocation5 + $0x10] sm:$0xff]   ;;  %v1064_v27 = vld [vmem:[#allocation5 + $0x18] sm:$0xff]  }
  0x5f   :  { %938 = vmatprep.subr.bf16.mxu0 %v1057_v3  ;;  %vm1370_vm6 = vmand %vm140_vm4, %vm141_vm5  ;;  %v1065_v29 = vld [vmem:[#allocation5 + $0x20] ss:$0 sps:$4 sm:$0xff]   ;;  %v1066_v34 = vld [vmem:[#allocation5 + $0x48] sm:$0xff]   ;;  %vm153_vm7 = vcmask 1047552   ;;  %vm154_vm8 = vsmask.f32 7424 }
  0x60   :  { %106 = vrot.lane.b32.xlu1 %v1346_v0, %s1231_s6  ;;  %104 = vrot.lane.b32.xlu0 %v1348_v1, %s1231_s6  ;;  %v296_v33 = vsel %vm209_vm0, %v1065_v29, 0  ;;  %vm1379_vm9 = vmand %vm153_vm7, %vm154_vm8  ;;  %v1067_v38 = vld [vmem:[#allocation5 + $0x50] sm:$0xff]   ;;  %v1068_v41 = vld [vmem:[#allocation5 + $0x58] sm:$0xff]   ;;  %vm824_vm10 = vcmask 523264  }
  0x61   :  { %v1069_v42 = vld [vmem:[#allocation5 + $0x60] sm:$0xff]   ;;  %v1070_v43 = vld [vmem:[#allocation5 + $0x68] ss:$0 sps:$4 sm:$0xff]   ;;  %v1071_v48 = vld [vmem:[#allocation8 + $0x24] sm:$0xff]  }
  0x62   :  { %939 = vmatpush3.bf16.msra.mxu0 %v1057_v3  ;;  %v391_v45 = vsel %vm209_vm0, %v1070_v43, 0  ;;  %v1072_v49 = vld [vmem:[#allocation8 + $0x2c] sm:$0xff]   ;;  %978 = vmatprep.subr.bf16.mxu1 %v1071_v48  ;;  %v1073_v50 = vld [vmem:[#allocation8 + $0x34] sm:$0xff]   ;;  %v1074_v51 = vld [vmem:[#allocation8 + $0x3c] sm:$0xff]  }
  0x63   :  { %940 = vmatprep.subr.bf16.mxu0 %v1058_v4  ;;  %979 = vmatpush3.bf16.msra.mxu1 %v1071_v48  ;;  %v871_v52 = vld [vmem:[#allocation7] ss:$0 sm:$0xff]  ;;  %v1075_v53 = vld [vmem:[#allocation8 + $0x44] ss:$0 sps:$4 sm:$0xff]  }
  0x64   :  { %110 = vrot.lane.b32.xlu1 %v1346_v0, %s1236_s4  ;;  %108 = vrot.lane.b32.xlu0 %v1348_v1, %s1236_s4  ;;  %v566_v57 = vsel %vm209_vm0, %v1075_v53, 0  ;;  %v1076_v62 = vld [vmem:[#allocation8] sm:$0xff]  }
  0x65   :  { %980 = vmatprep.subr.bf16.mxu1 %v1072_v49 }
  0x66   :  { %941 = vmatpush3.bf16.msra.mxu0 %v1058_v4 }
  0x67   :  { %942 = vmatprep.subr.bf16.mxu0 %v1059_v5  ;;  %981 = vmatpush3.bf16.msra.mxu1 %v1072_v49  ;;  %v818_v49 = vunpack.c.l.bf16 %v1346_v0 }
  0x68   :  { %982 = vmatprep.subr.bf16.mxu1 %v1073_v50 }
  0x6a   :  { %943 = vmatpush3.bf16.msra.mxu0 %v1059_v5 }
  0x6b   :  { %1036 = vmatprep.subr.msk.bf16.mxu0 %vm209_vm0, %v1060_v6  ;;  %983 = vmatpush3.bf16.msra.mxu1 %v1073_v50 }
  0x6c   :  { %984 = vmatprep.subr.bf16.mxu1 %v1074_v51 }
  0x6e   :  { %945 = vmatpush3.bf16.msra.mxu0 %v211_v7 }
  0x6f   :  { %950 = vmatprep.subr.bf16.mxu0 %v1061_v8  ;;  %985 = vmatpush3.bf16.msra.mxu1 %v1074_v51 }
  0x70   :  { %1039 = vmatprep.subr.msk.bf16.mxu1 %vm209_vm0, %v1075_v53 }
  0x73   :  { %987 = vmatpush3.bf16.msra.mxu1 %v566_v57 }
  0x74   :  { %992 = vmatprep.subr.bf16.mxu1 %v1076_v62 }
  0xce   :  { %v103_v9 = vpop.permute.xlu1 %102  ;;  %v101_v10 = vpop.permute.xlu0 %100 }
  0xd2   :  { %v107_v11 = vpop.permute.xlu1 %106  ;;  %v105_v12 = vpop.permute.xlu0 %104 }
  0xd3   :  { %v118_v13 = vsel %vm112_vm1, %v103_v9, %v107_v11  ;;  %v115_v14 = vsel %vm112_vm1, %v101_v10, %v105_v12 }
  0xd6   :  { %v111_v15 = vpop.permute.xlu1 %110  ;;  %v109_v16 = vpop.permute.xlu0 %108 }
  0xd7   :  { %v123_v17 = vsel %vm119_vm2, %v118_v13, %v111_v15  ;;  %v121_v18 = vsel %vm119_vm2, %v115_v14, %v109_v16 }
  0xd8   :  { %v124_v20 = vshrl.u32 %v121_v18, 16  ;;  %946 = vmatprep.mubr.msk.bf16.mxu0 %vm204_vm3, %v121_v18  ;;  %v131_v22 = vshll.u32 %v121_v18, 16  ;;  %v126_v28 = vshrl.u32 %v123_v17, 16  ;;  %v135_v32 = vshll.u32 %v123_v17, 16  ;;  %v1077_v18 = vld [vmem:[#allocation8 + $0x8] sm:$0xff]  }
  0xd9   :  { %947 = vmatmul.mubr.msk.bf16.vlgmr.msra.gmra.mrb[0].mxu0 %vm204_vm3, %v123_v17 }
  0xda   :  { %v130_v21 = vrot.slane %v124_v20, 7  ;;  %951 = vmatpush3.bf16.msra.mxu0 %v1061_v8  ;;  %v134_v30 = vrot.slane %v126_v28, 7  ;;  %v145_v31 = vrot.slane %v131_v22, 1  ;;  %v147_v44 = vrot.slane %v135_v32, 1 }
  0xdb   :  { %952 = vmatprep.subr.bf16.mxu0 %v1062_v19 }
  0xdc   :  { %v133_v25 = vor.u32 %v131_v22, %v130_v21  ;;  %v137_v35 = vor.u32 %v135_v32, %v134_v30  ;;  %v146_v36 = vor.u32 %v145_v31, %v124_v20  ;;  %v148_v46 = vor.u32 %v147_v44, %v126_v28 }
  0xde   :  { %953 = vmatpush3.bf16.msra.mxu0 %v1062_v19  ;;  %v143_v26 = vsel %vm1370_vm6, %v124_v20, %v133_v25  ;;  %v144_v39 = vsel %vm1370_vm6, %v126_v28, %v137_v35  ;;  %v156_v40 = vsel %vm1379_vm9, %v146_v36, %v131_v22  ;;  %v157_v47 = vsel %vm1379_vm9, %v148_v46, %v135_v32  ;;  %v1078_v22 = vld [vmem:[#allocation8 + $0x10] sm:$0xff]   ;;  %v1080_v28 = vld [vmem:[#allocation8 + $0x20] ss:$0 sps:$4 sm:$0xff]   ;;  %v893_v46 = vld [vmem:[#allocation10] ss:$0 sm:$0xff] }
  0xdf   :  { %960 = vmatprep.mubr.msk.bf16.mxu0 %vm204_vm3, %v143_v26  ;;  %954 = vmatprep.subr.bf16.mxu0 %v1063_v24  ;;  %v1079_v26 = vld [vmem:[#allocation8 + $0x18] sm:$0xff]   ;;  %v651_v32 = vsel %vm209_vm0, %v1080_v28, 0  ;;  %v1082_v36 = vld [vmem:[#allocation8 + $0x50] sm:$0xff]  }
  0xe2   :  { %955 = vmatpush3.bf16.msra.mxu0 %v1063_v24 }
  0xe3   :  { %956 = vmatprep.subr.bf16.mxu0 %v1064_v27 }
  0xe6   :  { %957 = vmatpush3.bf16.msra.mxu0 %v1064_v27 }
  0xe7   :  { %1037 = vmatprep.subr.msk.bf16.mxu0 %vm209_vm0, %v1065_v29 }
  0xea   :  { %959 = vmatpush3.bf16.msra.mxu0 %v296_v33  ;;  %v1081_v33 = vld [vmem:[#allocation8 + $0x48] sm:$0xff]  }
  0xeb   :  { %964 = vmatprep.subr.bf16.mxu0 %v1066_v34 }
  0xed   :  { %961 = vmatmul.mubr.msk.bf16.vlgmr.msra.gmra.mrb[0].mxu0 %vm204_vm3, %v144_v39 }
  0xee   :  { %965 = vmatpush3.bf16.msra.mxu0 %v1066_v34  ;;  %974 = vmatprep.mubr.msk.bf16.mxu0 %vm204_vm3, %v156_v40  ;;  %v1083_v40 = vld [vmem:[#allocation8 + $0x58] sm:$0xff]  }
  0xef   :  { %966 = vmatprep.subr.bf16.mxu0 %v1067_v38 }
  0xf2   :  { %967 = vmatpush3.bf16.msra.mxu0 %v1067_v38 }
  0xf3   :  { %968 = vmatprep.subr.bf16.mxu0 %v1068_v41 }
  0xf6   :  { %969 = vmatpush3.bf16.msra.mxu0 %v1068_v41  ;;  %v1084_v41 = vld [vmem:[#allocation8 + $0x60] sm:$0xff]  }
  0xf7   :  { %970 = vmatprep.subr.bf16.mxu0 %v1069_v42 }
  0xfa   :  { %971 = vmatpush3.bf16.msra.mxu0 %v1069_v42  ;;  %v1085_v42 = vld [vmem:[#allocation8 + $0x68] ss:$0 sps:$4 sm:$0xff]  }
  0xfb   :  { %1038 = vmatprep.subr.msk.bf16.mxu0 %vm209_vm0, %v1070_v43  ;;  %v746_v23 = vsel %vm209_vm0, %v1085_v42, 0 }
  0xfe   :  { %973 = vmatpush3.bf16.msra.mxu0 %v391_v45 }
 0x101   :  { %975 = vmatmul.mubr.msk.bf16.vlgmr.msra.gmra.mrb[0].mxu0 %vm204_vm3, %v157_v47 }
 0x1d4   :  { %v976_v54 = vpop.f32.mrb[0].mxu0 }
 0x1d5   :  { %v455_v55 = vadd.f32 %v976_v54, %v871_v52  ;;  %v427_v56 = vpop.f32.mrb[1].mxu0 }
 0x1d6   :  { %v453_v58 = vadd.f32 %v871_v52, %v427_v56  ;;  %v977_v59 = vpop.f32.mrb[2].mxu0  ;;  %v819_v56 = vunpack.c.h.bf16 %v1346_v0 }
 0x1d7   :  { %v456_v60 = vadd.f32 %v977_v59, %v871_v52  ;;  %v430_v61 = vpop.f32.mrb[3].mxu0  ;;  %v459_v2 = vmax.f32 %v455_v55, 0.0  ;;  %v817_v59 = vunpack.c.h.bf16 %v1348_v1 }
 0x1d8   :  { %v454_v63 = vadd.f32 %v871_v52, %v430_v61  ;;  %v457_v4 = vmax.f32 %v453_v58, 0.0  ;;  %v816_v52 = vunpack.c.l.bf16 %v1348_v1 }
 0x1d9   :  { %v460_v3 = vmax.f32 %v456_v60, 0.0 }
 0x1da   :  { %v458_v5 = vmax.f32 %v454_v63, 0.0 }
 0x1db   :  { %v462_v6 = vpack.c.bf16 %v460_v3, %v459_v2 }
 0x1dc   :  { %v461_v7 = vpack.c.bf16 %v458_v5, %v457_v4 }
 0x1dd   :  { %471 = vrot.lane.b32.xlu1 %v462_v6, %s1231_s6  ;;  %467 = vrot.lane.b32.xlu0 %v462_v6, %s1235_s29 }
 0x1e1   :  { %469 = vrot.lane.b32.xlu1 %v461_v7, %s1231_s6  ;;  %465 = vrot.lane.b32.xlu0 %v461_v7, %s1235_s29  ;;  %s1237_s6 = smov [#allocation11]  }
 0x1e2   :  { %s834_s3 = sshll.u32 %s1237_s6, 4  ;;  %s835_s3 = int_to_ptr.vmem [resolvable:$true] %s834_s3 }
 0x1e3   :  { %s1198_s21 = scalar_lea.vmem %s835_s3, 512  ;;  %p1203_p13 = scmp.lt.s32.totalorder %s835_s3, %s835_s3 }
 0x1e4   :  { %p1199_p12 = scmp.ne.s32.totalorder %s835_s3, %s1198_s21  ;;  %p1204_p0 = scmp.lt.s32.totalorder %s1198_s21, %s1198_s21 }
 0x1e5   :  { %475 = vrot.lane.b32.xlu1 %v462_v6, %s1236_s4  ;;  %473 = vrot.lane.b32.xlu0 %v461_v7, %s1236_s4 }
 0x1e6   :  { %p1205_p1 = por %p1204_p0, %p1203_p13 }
 0x1e8   :  { %p1206_p2 = pnand %p1205_p1, %p1199_p12 }
 0x24f   :  { %v472_v8 = vpop.permute.xlu1 %471  ;;  %v468_v9 = vpop.permute.xlu0 %467 }
 0x250   :  { %v482_v12 = vsel %vm112_vm1, %v468_v9, %v472_v8 }
 0x253   :  { %v470_v10 = vpop.permute.xlu1 %469  ;;  %v466_v11 = vpop.permute.xlu0 %465 }
 0x254   :  { %v479_v13 = vsel %vm112_vm1, %v466_v11, %v470_v10 }
 0x257   :  { %v476_v14 = vpop.permute.xlu1 %475  ;;  %v474_v15 = vpop.permute.xlu0 %473 }
 0x258   :  { %v486_v16 = vsel %vm119_vm2, %v482_v12, %v476_v14  ;;  %v484_v17 = vsel %vm119_vm2, %v479_v13, %v474_v15 }
 0x259   :  { %v487_v19 = vshrl.u32 %v484_v17, 16  ;;  %988 = vmatprep.mubr.msk.bf16.mxu1 %vm204_vm3, %v484_v17  ;;  %v494_v21 = vshll.u32 %v484_v17, 16  ;;  %v489_v27 = vshrl.u32 %v486_v16, 16  ;;  %v498_v31 = vshll.u32 %v486_v16, 16 }
 0x25a   :  { %989 = vmatmul.mubr.msk.bf16.vlgmr.msra.gmra.mrb[0].mxu1 %vm204_vm3, %v486_v16 }
 0x25b   :  { %v493_v20 = vrot.slane %v487_v19, 7  ;;  %993 = vmatpush3.bf16.msra.mxu1 %v1076_v62  ;;  %v497_v29 = vrot.slane %v489_v27, 7  ;;  %v505_v30 = vrot.slane %v494_v21, 1  ;;  %v507_v43 = vrot.slane %v498_v31, 1 }
 0x25c   :  { %994 = vmatprep.subr.bf16.mxu1 %v1077_v18 }
 0x25d   :  { %v496_v24 = vor.u32 %v494_v21, %v493_v20  ;;  %v500_v34 = vor.u32 %v498_v31, %v497_v29  ;;  %v506_v35 = vor.u32 %v505_v30, %v487_v19  ;;  %v508_v44 = vor.u32 %v507_v43, %v489_v27 }
 0x25f   :  { %995 = vmatpush3.bf16.msra.mxu1 %v1077_v18  ;;  %v503_v25 = vsel %vm1370_vm6, %v487_v19, %v496_v24  ;;  %v504_v38 = vsel %vm1370_vm6, %v489_v27, %v500_v34  ;;  %v513_v39 = vsel %vm1379_vm9, %v506_v35, %v494_v21  ;;  %v514_v45 = vsel %vm1379_vm9, %v508_v44, %v498_v31 }
 0x260   :  { %1002 = vmatprep.mubr.msk.bf16.mxu1 %vm204_vm3, %v503_v25  ;;  %996 = vmatprep.subr.bf16.mxu1 %v1078_v22 }
 0x263   :  { %997 = vmatpush3.bf16.msra.mxu1 %v1078_v22 }
 0x264   :  { %998 = vmatprep.subr.bf16.mxu1 %v1079_v26 }
 0x267   :  { %999 = vmatpush3.bf16.msra.mxu1 %v1079_v26 }
 0x268   :  { %1040 = vmatprep.subr.msk.bf16.mxu1 %vm209_vm0, %v1080_v28 }
 0x26b   :  { %1001 = vmatpush3.bf16.msra.mxu1 %v651_v32 }
 0x26c   :  { %1006 = vmatprep.subr.bf16.mxu1 %v1081_v33 }
 0x26e   :  { %1003 = vmatmul.mubr.msk.bf16.vlgmr.msra.gmra.mrb[0].mxu1 %vm204_vm3, %v504_v38 }
 0x26f   :  { %1007 = vmatpush3.bf16.msra.mxu1 %v1081_v33  ;;  %1016 = vmatprep.mubr.msk.bf16.mxu1 %vm204_vm3, %v513_v39 }
 0x270   :  { %1008 = vmatprep.subr.bf16.mxu1 %v1082_v36 }
 0x273   :  { %1009 = vmatpush3.bf16.msra.mxu1 %v1082_v36 }
 0x274   :  { %1010 = vmatprep.subr.bf16.mxu1 %v1083_v40 }
 0x277   :  { %1011 = vmatpush3.bf16.msra.mxu1 %v1083_v40 }
 0x278   :  { %1012 = vmatprep.subr.bf16.mxu1 %v1084_v41 }
 0x27b   :  { %1013 = vmatpush3.bf16.msra.mxu1 %v1084_v41 }
 0x27c   :  { %1041 = vmatprep.subr.msk.bf16.mxu1 %vm209_vm0, %v1085_v42 }
 0x27f   :  { %1015 = vmatpush3.bf16.msra.mxu1 %v746_v23 }
 0x282   :  { %1017 = vmatmul.mubr.msk.bf16.vlgmr.msra.gmra.mrb[0].mxu1 %vm204_vm3, %v514_v45 }
 0x355   :  { %v1018_v47 = vpop.f32.mrb[0].mxu1 }
 0x356   :  { %v810_v48 = vadd.f32 %v1018_v47, %v893_v46  ;;  %v782_v50 = vpop.f32.mrb[1].mxu1 }
 0x357   :  { %v808_v51 = vadd.f32 %v893_v46, %v782_v50  ;;  %v1019_v53 = vpop.f32.mrb[2].mxu1 }
 0x358   :  { %v814_v54 = vmax.f32 %v810_v48, 0.0  ;;  %v811_v55 = vadd.f32 %v1019_v53, %v893_v46  ;;  %v785_v57 = vpop.f32.mrb[3].mxu1 }
 0x359   :  { %v812_v37 = vmax.f32 %v808_v51, 0.0  ;;  %v809_v58 = vadd.f32 %v893_v46, %v785_v57 }
 0x35a   :  { %v822_v60 = vadd.f32 %v818_v49, %v814_v54  ;;  %v815_v61 = vmax.f32 %v811_v55, 0.0 }
 0x35b   :  { %v820_v62 = vadd.f32 %v816_v52, %v812_v37  ;;  %v813_v63 = vmax.f32 %v809_v58, 0.0 }
 0x35c   :  { %827 = vst.msk [vmem:[#allocation11 + $0x10] sm:$0xff] %vm824_vm10, %v822_v60  ;;  %v823_v2 = vadd.f32 %v819_v56, %v815_v61 }
 0x35d   :  { %825 = vst.msk [vmem:[#allocation11] sm:$0xff] %vm824_vm10, %v820_v62  ;;  %v821_v3 = vadd.f32 %v817_v59, %v813_v63 }
 0x35e   :  { %828 = vst.msk [vmem:[#allocation11 + $0x18] sm:$0xff] %vm824_vm10, %v823_v2 }
 0x35f   :  { %826 = vst.msk [vmem:[#allocation11 + $0x8] sm:$0xff] %vm824_vm10, %v821_v3 }
 0x360   :  { %1209 = shalt.err (!%p1206_p2)
}
 0x361   :  { %s1210_s9 = scalar_lea.hbm %s1449_s5, 512 }
 0x362   :  { %p1211_p3 = scmp.ne.s32.totalorder %s1449_s5, %s1210_s9  ;;  %p1214_p4 = scmp.lt.u32.totalorder %s1210_s9, %s1449_s5 }
 0x364   :  { %p1216_p5 = pnand %p1214_p4, %p1211_p3 }
 0x366   :  { %1219 = shalt.err (!%p1216_p5)
}
 0x367   :  { %s1238_s14 = smov 128   ;;  %s1239_s15 = smov 8  }
 0x368   :  { %840 = dma.vmem_to_hbm [thread:$0]  %s835_s3, 512, %s1449_s5, [#allocation4], %s1238_s14, %s1238_s14, %s1239_s15  }
 0x369   :  { %1226 = dma.done.wait [#allocation4], 512  }
 0x36a   :  { %1227 = vsyncadd [#allocation4], 4294966784 }
 0x36b   :  { %844 = vsyncpa [#allocation3], 1 }
 0x36c   :  { %845 = vsyncpa [#allocation6], 1 }
 0x36d   :  { %846 = vsyncpa [#allocation9], 1 }
 0x36e   :  { %847 = vsyncpa [#allocation4], 1 }

</bundles_post_ra>
